<compile_context>
chip_gen: v5e
topology: v5e:2x2
jax: 0.10.0
libtpu: 0.0.40
codegen_flags: <defaults>
</compile_context>

<pallas_src>
import jax
import jax.numpy as jnp
from jax.experimental import pallas as pl
from jax.experimental.pallas import tpu as pltpu

_LANE = 128
_MIB = 1024 * 1024


def _round_up(x, n):
    return ((x + n - 1) // n) * n


def _vmem_capacity_bytes():
    """Physical VMEM of the local chip; falls back to 64 MiB (v7x, smallest)."""
    try:
        info = pltpu.get_tpu_info()
        cap = getattr(info, "vmem_capacity_bytes", None)
        if cap:
            return int(cap)
    except Exception:
        pass
    return 64 * _MIB


# ----------------------------------------------------------------------------
# Kernels
# ----------------------------------------------------------------------------
def _mlp_kernel_fused(x_ref, w1_ref, b1_ref, w2_ref, b2_ref, o_ref):
    """Both weight matrices resident in VMEM; one M tile per grid step."""
    cdt = w1_ref.dtype
    # layer 1: x @ W1 + b1, ReLU   (MXU matmul, f32 accumulation)
    h = jnp.dot(x_ref[...].astype(cdt), w1_ref[...],
                preferred_element_type=jnp.float32)
    h = jnp.maximum(h + b1_ref[...], 0.0)
    # layer 2: h @ W2 + b2.  h hands off in the compute dtype (bf16 when
    # enabled); accumulation stays f32.
    o = jnp.dot(h.astype(cdt), w2_ref[...], preferred_element_type=jnp.float32)
    o_ref[...] = (o + b2_ref[...]).astype(o_ref.dtype)


def _mlp_kernel_htiled(x_ref, w1_ref, b1_ref, w2_ref, b2_ref, o_ref, acc_ref):
    """Hidden dim tiled along grid axis 1; layer-2 partials accumulated in f32.

    Correct because the hidden-dim padding (done once at prepare time) is
    zeros: padded h columns are relu(0 + 0) = 0 and padded W2 rows are 0.
    """
    k = pl.program_id(1)

    @pl.when(k == 0)
    def _init():
        acc_ref[...] = jnp.zeros_like(acc_ref)

    cdt = w1_ref.dtype
    h = jnp.dot(x_ref[...].astype(cdt), w1_ref[...],
                preferred_element_type=jnp.float32)
    h = jnp.maximum(h + b1_ref[...], 0.0)
    acc_ref[...] += jnp.dot(h.astype(cdt), w2_ref[...],
                            preferred_element_type=jnp.float32)

    @pl.when(k == pl.num_programs(1) - 1)
    def _finalize():
        o_ref[...] = (acc_ref[...] + b2_ref[...]).astype(o_ref.dtype)


# ----------------------------------------------------------------------------
# Parameter preparation (hoisted out of the per-call wrapper)
# ----------------------------------------------------------------------------
def prepare_mlp_params(w1, b1, w2, b2, *, compute_dtype=jnp.bfloat16):
    """Pad / cast the MLP parameters ONCE.

    w1: (d_in, d_hidden), b1: (d_hidden,) or (1, d_hidden),
    w2: (d_hidden, d_out), b2: (d_out,)   or (1, d_out).
    compute_dtype=bf16 (default) is the fast MXU path on v6e/v7x; pass
    jnp.float32 (or None to keep the weight dtype) for exact f32 semantics.
    """
    d_in, d_hidden = w1.shape
    d_out = w2.shape[1]
    cdt = (jnp.dtype(compute_dtype) if compute_dtype is not None
           else jnp.dtype(w1.dtype))

    b1 = jnp.reshape(b1, (1, d_hidden))
    b2 = jnp.reshape(b2, (1, d_out))

    # Only the hidden dim is lane-padded (with zeros) so it can be cleanly
    # tiled when the resident weights do not fit VMEM.
    d_h_p = _round_up(d_hidden, _LANE)
    if d_h_p != d_hidden:
        pad = d_h_p - d_hidden
        w1 = jnp.pad(w1, ((0, 0), (0, pad)))
        b1 = jnp.pad(b1, ((0, 0), (0, pad)))
        w2 = jnp.pad(w2, ((0, pad), (0, 0)))

    return dict(
        w1=w1.astype(cdt), b1=b1.astype(jnp.float32),
        w2=w2.astype(cdt), b2=b2.astype(jnp.float32),
        d_in=d_in, d_hidden=d_hidden, d_out=d_out, d_h_p=d_h_p,
        compute_dtype=cdt,
    )


# ----------------------------------------------------------------------------
# Wrapper
# ----------------------------------------------------------------------------
def mlp_pallas(x, params, *, block_m=512, max_hidden_tile=None):
    """y = relu(x @ W1 + b1) @ W2 + b2 fused on TPU.  x: (..., d_in)."""
    d_in, d_out, d_h_p = params["d_in"], params["d_out"], params["d_h_p"]
    w1, b1, w2, b2 = params["w1"], params["b1"], params["w2"], params["b2"]
    cdt = params["compute_dtype"]
    out_dtype = x.dtype

    *lead, d_in_x = x.shape
    assert d_in_x == d_in, f"expected last dim {d_in}, got {d_in_x}"
    x2 = x.reshape(-1, d_in)
    m = x2.shape[0]

    itemsize = jnp.dtype(cdt).itemsize
    x_itemsize = x2.dtype.itemsize
    o_itemsize = jnp.dtype(out_dtype).itemsize

    # --- M tile: big enough to amortize grid-step overhead, 16-row aligned for
    #     bf16 sublane packing.  Ragged last block is fine (rows independent,
    #     OOB rows never stored).
    row_align = 16 if (cdt == jnp.bfloat16
                       or jnp.dtype(out_dtype) == jnp.bfloat16) else 8
    bm = m if m <= block_m else _round_up(block_m, row_align)

    # --- VMEM budget (includes the fused intermediate h and the accumulator).
    vmem_cap = _vmem_capacity_bytes()
    headroom = max(8 * _MIB, vmem_cap // 8)     # Mosaic internal scratch, sems
    budget = vmem_cap - headroom

    def footprint(bm_, tk_):
        w_bytes = 2 * (d_in * tk_ + tk_ * d_out) * itemsize  # conservative: 2x
        b_bytes = 2 * (tk_ + d_out) * 4
        x_bytes = 2 * bm_ * d_in * x_itemsize                 # double-buffered
        o_bytes = 2 * bm_ * d_out * o_itemsize                # double-buffered
        h_bytes = bm_ * tk_ * (4 + itemsize)                  # f32 h + cast copy
        acc_bytes = bm_ * d_out * 4
        return w_bytes + b_bytes + x_bytes + o_bytes + h_bytes + acc_bytes

    # Pick the hidden tile: keep weights fully resident if they fit; otherwise
    # halve tk (stays a 128-multiple that divides d_h_p).  If still over
    # budget, shrink the M tile too.
    tk = d_h_p
    while ((footprint(bm, tk) > budget
            or (max_hidden_tile is not None and tk > max_hidden_tile))
           and tk > _LANE and (tk // _LANE) % 2 == 0):
        tk //= 2
    while footprint(bm, tk) > budget and bm > 64:
        bm = max(64, _round_up(bm // 2, row_align))

    n_m = pl.cdiv(m, bm)
    n_k = d_h_p // tk

    need = footprint(bm, tk)
    sems = ("parallel",) if n_k == 1 else ("parallel", "arbitrary")
    cp_kwargs = dict(dimension_semantics=sems)
    if need > 14 * _MIB:   # above the smallest default scoped limit (v5e 16 MiB)
        cp_kwargs["vmem_limit_bytes"] = int(min(need * 5 // 4, budget))

    flops = 2 * m * (d_in * d_h_p + d_h_p * d_out)
    w_stream = (w1.size + w2.size) * itemsize * (1 if n_k == 1 else n_m)
    bytes_accessed = int(x2.size * x_itemsize + w_stream
                         + (b1.size + b2.size) * 4 + m * d_out * o_itemsize)
    cost = pl.CostEstimate(flops=flops, transcendentals=0,
                           bytes_accessed=bytes_accessed)

    out_shape = jax.ShapeDtypeStruct((m, d_out), out_dtype)

    if n_k == 1:
        # Weights fully resident; grid-invariant operands single-buffered.
        def build(single_buffer):
            pm = dict(pipeline_mode=pl.Buffered(1)) if single_buffer else {}
            in_specs = [
                pl.BlockSpec((bm, d_in), lambda i: (i, 0)),           # x tile
                pl.BlockSpec((d_in, d_h_p), lambda i: (0, 0), **pm),  # W1
                pl.BlockSpec((1, d_h_p), lambda i: (0, 0), **pm),     # b1
                pl.BlockSpec((d_h_p, d_out), lambda i: (0, 0), **pm), # W2
                pl.BlockSpec((1, d_out), lambda i: (0, 0), **pm),     # b2
            ]
            return pl.pallas_call(
                _mlp_kernel_fused,
                out_shape=out_shape,
                grid_spec=pltpu.PrefetchScalarGridSpec(
                    num_scalar_prefetch=0,
                    grid=(n_m,),
                    in_specs=in_specs,
                    out_specs=pl.BlockSpec((bm, d_out), lambda i: (i, 0)),
                ),
                compiler_params=pltpu.CompilerParams(**cp_kwargs),
                cost_estimate=cost,
            )
        try:
            out = build(True)(x2, w1, b1, w2, b2)
        except Exception:
            # pipeline_mode=pl.Buffered(1) not supported on this JAX version:
            # fall back to default (double) buffering of the resident weights.
            out = build(False)(x2, w1, b1, w2, b2)
    else:
        # Hidden dim tiled: accumulate layer-2 partials in f32 VMEM scratch.
        out = pl.pallas_call(
            _mlp_kernel_htiled,
            out_shape=out_shape,
            grid_spec=pltpu.PrefetchScalarGridSpec(
                num_scalar_prefetch=0,
                grid=(n_m, n_k),
                in_specs=[
                    pl.BlockSpec((bm, d_in), lambda i, k: (i, 0)),   # x tile
                    pl.BlockSpec((d_in, tk), lambda i, k: (0, k)),   # W1 k-tile
                    pl.BlockSpec((1, tk), lambda i, k: (0, k)),      # b1 k-tile
                    pl.BlockSpec((tk, d_out), lambda i, k: (k, 0)),  # W2 k-tile
                    pl.BlockSpec((1, d_out), lambda i, k: (0, 0)),   # b2
                ],
                out_specs=pl.BlockSpec((bm, d_out), lambda i, k: (i, 0)),
                scratch_shapes=[pltpu.VMEM((bm, d_out), jnp.float32)],
            ),
            compiler_params=pltpu.CompilerParams(**cp_kwargs),
            cost_estimate=cost,
        )(x2, w1, b1, w2, b2)

    return out.reshape(*lead, d_out)


# ----------------------------------------------------------------------------
# Init + self test
# ----------------------------------------------------------------------------
def init_mlp_params(key, d_in, d_hidden, d_out, dtype=jnp.float32):
    """Deterministic PyTorch-Linear-style uniform init (1-D biases)."""
    k1, k2, k3, k4 = jax.random.split(key, 4)
    lim1 = 1.0 / (d_in ** 0.5)
    lim2 = 1.0 / (d_hidden ** 0.5)
    w1 = jax.random.uniform(k1, (d_in, d_hidden), dtype, -lim1, lim1)
    b1 = jax.random.uniform(k2, (d_hidden,), dtype, -lim1, lim1)
    w2 = jax.random.uniform(k3, (d_hidden, d_out), dtype, -lim2, lim2)
    b2 = jax.random.uniform(k4, (d_out,), dtype, -lim2, lim2)
    return w1, b1, w2, b2


if __name__ == "__main__":
    # MLP(n_layers=2, d_in=32, d_out=32) -> d_hidden = 4 * d_out = 128
    batch, seq, d_in = 2, 8, 32
    d_out = 32
    d_hidden = 4 * d_out

    key = jax.random.PRNGKey(0)
    kx, kp = jax.random.split(key)
    x = jax.random.normal(kx, (batch, seq, d_in), dtype=jnp.float32)
    w1, b1, w2, b2 = init_mlp_params(kp, d_in, d_hidden, d_out)

    xf = x.reshape(-1, d_in)
    ref = (jnp.maximum(xf @ w1 + b1, 0.0) @ w2 + b2).reshape(batch, seq, d_out)

    # 1) exact f32 compute path (module-exact semantics), tight tolerance.
    p_f32 = prepare_mlp_params(w1, b1, w2, b2, compute_dtype=jnp.float32)
    y = jax.block_until_ready(mlp_pallas(x, p_f32))
    assert y.shape == (batch, seq, d_out)
    assert jnp.allclose(y, ref, atol=1e-5, rtol=1e-5), "f32 mismatch vs reference"

    # 2) default bf16 compute path (v6e/v7x MXU fast path), looser tolerance.
    p_bf16 = prepare_mlp_params(w1, b1, w2, b2)            # default bf16
    y_bf16 = jax.block_until_ready(mlp_pallas(x, p_bf16))
    assert y_bf16.shape == (batch, seq, d_out)
    assert float(jnp.max(jnp.abs(y_bf16 - ref))) < 0.1, "bf16 mismatch vs reference"

    # 3) hidden-dim-tiled path (exercises the accumulator kernel), f32, tight.
    d_hidden2 = 256
    w1b, b1b, w2b, b2b = init_mlp_params(kp, d_in, d_hidden2, d_out)
    ref2 = (jnp.maximum(xf @ w1b + b1b, 0.0) @ w2b + b2b).reshape(batch, seq, d_out)
    p2 = prepare_mlp_params(w1b, b1b, w2b, b2b, compute_dtype=jnp.float32)
    y2 = jax.block_until_ready(mlp_pallas(x, p2, max_hidden_tile=128))
    assert jnp.allclose(y2, ref2, atol=1e-5, rtol=1e-5), "h-tiled mismatch vs reference"

    print("KERNEL_OK")
</pallas_src>

<mosaic_0001>
module attributes {stable_mosaic.version = 11 : i64} {
  func.func @_mlp_kernel_fused(%arg0: i32, %arg1: memref<16x32xf32, #tpu.memory_space<vmem>>, %arg2: memref<32x128xf32, #tpu.memory_space<vmem>>, %arg3: memref<1x128xf32, #tpu.memory_space<vmem>>, %arg4: memref<128x32xf32, #tpu.memory_space<vmem>>, %arg5: memref<1x32xf32, #tpu.memory_space<vmem>>, %arg6: memref<16x32xf32, #tpu.memory_space<vmem>>) attributes {dimension_semantics = [#tpu.dimension_semantics<parallel>], iteration_bounds = array<i64: 1>, scalar_prefetch = 0 : i64, scratch_operands = 0 : i64, tpu.core_type = #tpu.core_type<tc>, window_params = [{transform_indices = @transform_0, window_bounds = array<i64: 16, 32>}, {pipeline_mode = #tpu.pipeline_mode<synchronous>, transform_indices = @transform_1, window_bounds = array<i64: 32, 128>}, {pipeline_mode = #tpu.pipeline_mode<synchronous>, transform_indices = @transform_2, window_bounds = array<i64: 1, 128>}, {pipeline_mode = #tpu.pipeline_mode<synchronous>, transform_indices = @transform_3, window_bounds = array<i64: 128, 32>}, {pipeline_mode = #tpu.pipeline_mode<synchronous>, transform_indices = @transform_4, window_bounds = array<i64: 1, 32>}, {transform_indices = @transform_5, window_bounds = array<i64: 16, 32>}]} {
    %c0 = arith.constant 0 : index
    %c0_0 = arith.constant 0 : index
    %0 = vector.load %arg1[%c0, %c0_0] : memref<16x32xf32, #tpu.memory_space<vmem>>, vector<16x32xf32>
    %c0_1 = arith.constant 0 : index
    %c0_2 = arith.constant 0 : index
    %1 = vector.load %arg2[%c0_1, %c0_2] : memref<32x128xf32, #tpu.memory_space<vmem>>, vector<32x128xf32>
    %cst = arith.constant dense<0.000000e+00> : vector<16x128xf32>
    %2 = tpu.matmul %0, %1, %cst {dimension_numbers = #tpu.dot_dimension_numbers<[1], [0], [0], [1], [0, 0, 1, 1], [], []>} : vector<16x32xf32>, vector<32x128xf32>, vector<16x128xf32> -> vector<16x128xf32>
    %c0_3 = arith.constant 0 : index
    %c0_4 = arith.constant 0 : index
    %3 = vector.load %arg3[%c0_3, %c0_4] : memref<1x128xf32, #tpu.memory_space<vmem>>, vector<1x128xf32>
    %4 = vector.broadcast %3 : vector<1x128xf32> to vector<16x128xf32>
    %5 = arith.addf %2, %4 : vector<16x128xf32>
    %cst_5 = arith.constant 0.000000e+00 : f32
    %6 = vector.broadcast %cst_5 : f32 to vector<16x128xf32>
    %7 = arith.maximumf %5, %6 : vector<16x128xf32>
    %c0_6 = arith.constant 0 : index
    %c0_7 = arith.constant 0 : index
    %8 = vector.load %arg4[%c0_6, %c0_7] : memref<128x32xf32, #tpu.memory_space<vmem>>, vector<128x32xf32>
    %cst_8 = arith.constant dense<0.000000e+00> : vector<16x32xf32>
    %9 = tpu.matmul %7, %8, %cst_8 {dimension_numbers = #tpu.dot_dimension_numbers<[1], [0], [0], [1], [0, 0, 1, 1], [], []>} : vector<16x128xf32>, vector<128x32xf32>, vector<16x32xf32> -> vector<16x32xf32>
    %c0_9 = arith.constant 0 : index
    %c0_10 = arith.constant 0 : index
    %10 = vector.load %arg5[%c0_9, %c0_10] : memref<1x32xf32, #tpu.memory_space<vmem>>, vector<1x32xf32>
    %11 = vector.broadcast %10 : vector<1x32xf32> to vector<16x32xf32>
    %12 = arith.addf %9, %11 : vector<16x32xf32>
    %c0_11 = arith.constant 0 : index
    %c0_12 = arith.constant 0 : index
    %13 = vector.load %arg6[%c0_11, %c0_12] : memref<16x32xf32, #tpu.memory_space<vmem>>, vector<16x32xf32>
    tpu.vector_store %arg6[%c0_11, %c0_12], %12 {strides = array<i32>} : memref<16x32xf32, #tpu.memory_space<vmem>>, vector<16x32xf32>,
    return
  }
  func.func @transform_0(%arg0: i32) -> (i32, i32) {
    %c0_i32 = arith.constant 0 : i32
    %c0_i32_0 = arith.constant 0 : i32
    return %arg0, %c0_i32 : i32, i32
  }
  func.func @transform_1(%arg0: i32) -> (i32, i32) {
    %c0_i32 = arith.constant 0 : i32
    %c0_i32_0 = arith.constant 0 : i32
    %c0_i32_1 = arith.constant 0 : i32
    return %c0_i32, %c0_i32_0 : i32, i32
  }
  func.func @transform_2(%arg0: i32) -> (i32, i32) {
    %c0_i32 = arith.constant 0 : i32
    %c0_i32_0 = arith.constant 0 : i32
    %c0_i32_1 = arith.constant 0 : i32
    return %c0_i32, %c0_i32_0 : i32, i32
  }
  func.func @transform_3(%arg0: i32) -> (i32, i32) {
    %c0_i32 = arith.constant 0 : i32
    %c0_i32_0 = arith.constant 0 : i32
    %c0_i32_1 = arith.constant 0 : i32
    return %c0_i32, %c0_i32_0 : i32, i32
  }
  func.func @transform_4(%arg0: i32) -> (i32, i32) {
    %c0_i32 = arith.constant 0 : i32
    %c0_i32_0 = arith.constant 0 : i32
    %c0_i32_1 = arith.constant 0 : i32
    return %c0_i32, %c0_i32_0 : i32, i32
  }
  func.func @transform_5(%arg0: i32) -> (i32, i32) {
    %c0_i32 = arith.constant 0 : i32
    %c0_i32_0 = arith.constant 0 : i32
    return %arg0, %c0_i32 : i32, i32
  }
}

module attributes {stable_mosaic.version = 11 : i64} {
  func.func @_mlp_kernel_fused(%arg0: i32, %arg1: memref<16x32xf32, #tpu.memory_space<vmem>>, %arg2: memref<32x128xf32, #tpu.memory_space<vmem>>, %arg3: memref<1x128xf32, #tpu.memory_space<vmem>>, %arg4: memref<128x32xf32, #tpu.memory_space<vmem>>, %arg5: memref<1x32xf32, #tpu.memory_space<vmem>>, %arg6: memref<16x32xf32, #tpu.memory_space<vmem>>) attributes {dimension_semantics = [#tpu.dimension_semantics<parallel>], iteration_bounds = array<i64: 1>, scalar_prefetch = 0 : i64, scratch_operands = 0 : i64, tpu.core_type = #tpu.core_type<tc>, window_params = [{transform_indices = @transform_0, window_bounds = array<i64: 16, 32>}, {pipeline_mode = #tpu.pipeline_mode<synchronous>, transform_indices = @transform_1, window_bounds = array<i64: 32, 128>}, {pipeline_mode = #tpu.pipeline_mode<synchronous>, transform_indices = @transform_2, window_bounds = array<i64: 1, 128>}, {pipeline_mode = #tpu.pipeline_mode<synchronous>, transform_indices = @transform_3, window_bounds = array<i64: 128, 32>}, {pipeline_mode = #tpu.pipeline_mode<synchronous>, transform_indices = @transform_4, window_bounds = array<i64: 1, 32>}, {transform_indices = @transform_5, window_bounds = array<i64: 16, 32>}]} {
    %c0 = arith.constant 0 : index
    %c0_0 = arith.constant 0 : index
    %0 = vector.load %arg1[%c0, %c0_0] : memref<16x32xf32, #tpu.memory_space<vmem>>, vector<16x32xf32>
    %c0_1 = arith.constant 0 : index
    %c0_2 = arith.constant 0 : index
    %1 = vector.load %arg2[%c0_1, %c0_2] : memref<32x128xf32, #tpu.memory_space<vmem>>, vector<32x128xf32>
    %cst = arith.constant dense<0.000000e+00> : vector<16x128xf32>
    %2 = tpu.matmul %0, %1, %cst {dimension_numbers = #tpu.dot_dimension_numbers<[1], [0], [0], [1], [0, 0, 1, 1], [], []>} : vector<16x32xf32>, vector<32x128xf32>, vector<16x128xf32> -> vector<16x128xf32>
    %c0_3 = arith.constant 0 : index
    %c0_4 = arith.constant 0 : index
    %3 = vector.load %arg3[%c0_3, %c0_4] : memref<1x128xf32, #tpu.memory_space<vmem>>, vector<1x128xf32>
    %4 = vector.broadcast %3 : vector<1x128xf32> to vector<16x128xf32>
    %5 = arith.addf %2, %4 : vector<16x128xf32>
    %cst_5 = arith.constant 0.000000e+00 : f32
    %6 = vector.broadcast %cst_5 : f32 to vector<16x128xf32>
    %7 = arith.maximumf %5, %6 : vector<16x128xf32>
    %c0_6 = arith.constant 0 : index
    %c0_7 = arith.constant 0 : index
    %8 = vector.load %arg4[%c0_6, %c0_7] : memref<128x32xf32, #tpu.memory_space<vmem>>, vector<128x32xf32>
    %cst_8 = arith.constant dense<0.000000e+00> : vector<16x32xf32>
    %9 = tpu.matmul %7, %8, %cst_8 {dimension_numbers = #tpu.dot_dimension_numbers<[1], [0], [0], [1], [0, 0, 1, 1], [], []>} : vector<16x128xf32>, vector<128x32xf32>, vector<16x32xf32> -> vector<16x32xf32>
    %c0_9 = arith.constant 0 : index
    %c0_10 = arith.constant 0 : index
    %10 = vector.load %arg5[%c0_9, %c0_10] : memref<1x32xf32, #tpu.memory_space<vmem>>, vector<1x32xf32>
    %11 = vector.broadcast %10 : vector<1x32xf32> to vector<16x32xf32>
    %12 = arith.addf %9, %11 : vector<16x32xf32>
    %c0_11 = arith.constant 0 : index
    %c0_12 = arith.constant 0 : index
    %13 = vector.load %arg6[%c0_11, %c0_12] : memref<16x32xf32, #tpu.memory_space<vmem>>, vector<16x32xf32>
    tpu.vector_store %arg6[%c0_11, %c0_12], %12 {strides = array<i32>} : memref<16x32xf32, #tpu.memory_space<vmem>>, vector<16x32xf32>,
    return
  }
  func.func @transform_0(%arg0: i32) -> (i32, i32) {
    %c0_i32 = arith.constant 0 : i32
    %c0_i32_0 = arith.constant 0 : i32
    return %arg0, %c0_i32 : i32, i32
  }
  func.func @transform_1(%arg0: i32) -> (i32, i32) {
    %c0_i32 = arith.constant 0 : i32
    %c0_i32_0 = arith.constant 0 : i32
    %c0_i32_1 = arith.constant 0 : i32
    return %c0_i32, %c0_i32_0 : i32, i32
  }
  func.func @transform_2(%arg0: i32) -> (i32, i32) {
    %c0_i32 = arith.constant 0 : i32
    %c0_i32_0 = arith.constant 0 : i32
    %c0_i32_1 = arith.constant 0 : i32
    return %c0_i32, %c0_i32_0 : i32, i32
  }
  func.func @transform_3(%arg0: i32) -> (i32, i32) {
    %c0_i32 = arith.constant 0 : i32
    %c0_i32_0 = arith.constant 0 : i32
    %c0_i32_1 = arith.constant 0 : i32
    return %c0_i32, %c0_i32_0 : i32, i32
  }
  func.func @transform_4(%arg0: i32) -> (i32, i32) {
    %c0_i32 = arith.constant 0 : i32
    %c0_i32_0 = arith.constant 0 : i32
    %c0_i32_1 = arith.constant 0 : i32
    return %c0_i32, %c0_i32_0 : i32, i32
  }
  func.func @transform_5(%arg0: i32) -> (i32, i32) {
    %c0_i32 = arith.constant 0 : i32
    %c0_i32_0 = arith.constant 0 : i32
    return %arg0, %c0_i32 : i32, i32
  }
}

</mosaic_0001>

<bundles_post_ra>
// kernel: tpu_custom_call.1
= control target key start
LH: loop header
LB: loop body
LE: loop exit
PB: predicated region body
PF: predicated region fallthrough
CT: control target
= control target key end

     0   :  { %vm31_vm0 = vcmask 261120   ;;  %s287_s0 = inlined_call_operand.vmem [shape: f32[16,32], index: 0, kind: input, shape index: {}]   ;;  %s288_s1 = inlined_call_operand.vmem [shape: f32[32,128], index: 1, kind: input, shape index: {}]   ;;  %s289_s2 = inlined_call_operand.vmem [shape: f32[1,128], index: 2, kind: input, shape index: {}]   ;;  %s290_s3 = inlined_call_operand.vmem [shape: f32[128,32], index: 3, kind: input, shape index: {}]   ;;  %s291_s4 = inlined_call_operand.vmem [shape: f32[1,32], index: 4, kind: input, shape index: {}]   ;;  %s292_s5 = inlined_call_operand.hbm [shape: f32[16,32], index: 5, kind: output, shape index: {}]  }
   0x1   :  { %v26_v0 = vld [vmem:[%s288_s1 + $0x18] sm:$0xff]  ;;  %v25_v1 = vld [vmem:[%s288_s1 + $0x10] sm:$0xff]  ;;  %v24_v2 = vld [vmem:[%s288_s1 + $0x8] sm:$0xff] }
   0x2   :  { %50 = vmatpush.msra.mxu0 %v26_v0  ;;  %v78_v3 = vld [vmem:[%s290_s3 + $0x78] sm:$0xff]  ;;  %v77_v4 = vld [vmem:[%s290_s3 + $0x70] sm:$0xff]  ;;  %v23_v5 = vld [vmem:[%s288_s1] sm:$0xff] }
   0x3   :  { %83 = vmatpush.msra.mxu1 %v78_v3  ;;  %v76_v6 = vld [vmem:[%s290_s3 + $0x68] sm:$0xff]  ;;  %128 = vmatpush.msra.mxu2 %v78_v3  ;;  %v21_v7 = vld [vmem:[%s287_s0] sm:$0xff] }
   0x4   :  { %51 = vmatpush.msra.mxu0 %v25_v1  ;;  %v75_v8 = vld [vmem:[%s290_s3 + $0x60] sm:$0xff] }
   0x5   :  { %84 = vmatpush.msra.mxu1 %v77_v4  ;;  %129 = vmatpush.msra.mxu2 %v77_v4 }
   0x6   :  { %52 = vmatpush.msra.mxu0 %v24_v2 }
   0x7   :  { %85 = vmatpush.msra.mxu1 %v76_v6 }
   0x8   :  { %53 = vmatpush.msra.mxu0 %v23_v5 }
   0x9   :  { %10 = vsyncpa [#allocation3], 0  ;;  %126 = vmatmul.msk.f32.vlgmr.msra.gmra.mxu0 %vm31_vm0, %v21_v7  ;;  %v74_v9 = vld [vmem:[%s290_s3 + $0x58] sm:$0xff]  ;;  %130 = vmatpush.msra.mxu2 %v76_v6  ;;  %v73_v10 = vld [vmem:[%s290_s3 + $0x50] sm:$0xff]  ;;  %s114_s15 = sshll.u32 %s292_s5, 4  ;;  %s176_s16 = smov 128   ;;  %s115_s15 = int_to_ptr.hbm [resolvable:$true] %s114_s15 }
   0xa   :  { %86 = vmatpush.msra.mxu1 %v75_v8  ;;  %v72_v11 = vld [vmem:[%s290_s3 + $0x48] sm:$0xff]  ;;  %v71_v13 = vld [vmem:[%s290_s3 + $0x40] sm:$0xff]  ;;  %v70_v14 = vld [vmem:[%s290_s3 + $0x38] sm:$0xff]  ;;  %s177_s17 = smov 8  }
   0xb   :  { %131 = vmatpush.msra.mxu2 %v75_v8  ;;  %v22_v12 = vld [vmem:[%s287_s0 + $0x8] sm:$0xff]  ;;  %v69_v15 = vld [vmem:[%s290_s3 + $0x30] sm:$0xff]  ;;  %v67_v17 = vld [vmem:[%s290_s3 + $0x20] sm:$0xff] }
   0xc   :  { %87 = vmatpush.msra.mxu1 %v74_v9  ;;  %v68_v16 = vld [vmem:[%s290_s3 + $0x28] sm:$0xff]  ;;  %v66_v18 = vld [vmem:[%s290_s3 + $0x18] sm:$0xff]  ;;  %v65_v19 = vld [vmem:[%s290_s3 + $0x10] sm:$0xff] }
   0xd   :  { %132 = vmatpush.msra.mxu2 %v74_v9  ;;  %v64_v20 = vld [vmem:[%s290_s3 + $0x8] sm:$0xff]  ;;  %v63_v21 = vld [vmem:[%s290_s3] sm:$0xff]  ;;  %s175_s3 = smov [#allocation2]  }
   0xe   :  { %88 = vmatpush.msra.mxu1 %v73_v10  ;;  %v147_v22 = vld [vmem:[%s289_s2] ss:$0 sm:$0xff]  ;;  %s112_s13 = sshll.u32 %s175_s3, 4  ;;  %s113_s13 = int_to_ptr.vmem [resolvable:$true] %s112_s13 }
   0xf   :  { %133 = vmatpush.msra.mxu2 %v73_v10  ;;  %v148_v29 = vld [vmem:[%s291_s4] ss:$0 sm:$0xff] }
  0x10   :  { %89 = vmatpush.msra.mxu1 %v72_v11 }
  0x11   :  { %127 = vmatmul.msk.f32.gmra.mxu0 %vm31_vm0, %v22_v12  ;;  %134 = vmatpush.msra.mxu2 %v72_v11 }
  0x12   :  { %90 = vmatpush.msra.mxu1 %v71_v13 }
  0x13   :  { %135 = vmatpush.msra.mxu2 %v71_v13 }
  0x14   :  { %91 = vmatpush.msra.mxu1 %v70_v14 }
  0x15   :  { %136 = vmatpush.msra.mxu2 %v70_v14 }
  0x16   :  { %92 = vmatpush.msra.mxu1 %v69_v15 }
  0x17   :  { %137 = vmatpush.msra.mxu2 %v69_v15 }
  0x18   :  { %93 = vmatpush.msra.mxu1 %v68_v16 }
  0x19   :  { %138 = vmatpush.msra.mxu2 %v68_v16 }
  0x1a   :  { %94 = vmatpush.msra.mxu1 %v67_v17 }
  0x1b   :  { %139 = vmatpush.msra.mxu2 %v67_v17 }
  0x1c   :  { %95 = vmatpush.msra.mxu1 %v66_v18 }
  0x1d   :  { %140 = vmatpush.msra.mxu2 %v66_v18 }
  0x1e   :  { %96 = vmatpush.msra.mxu1 %v65_v19 }
  0x1f   :  { %141 = vmatpush.msra.mxu2 %v65_v19 }
  0x20   :  { %97 = vmatpush.msra.mxu1 %v64_v20 }
  0x21   :  { %142 = vmatpush.msra.mxu2 %v64_v20 }
  0x22   :  { %98 = vmatpush.msra.mxu1 %v63_v21 }
  0x23   :  { %143 = vmatpush.msra.mxu2 %v63_v21 }
  0x86   :  { %v55_v23 = vpop.f32.mrf.mxu0 }
  0x87   :  { %v56_v24 = vadd.f32 %v147_v22, %v55_v23 }
  0x89   :  { %v61_v25 = vmax.f32 %v56_v24, 0.0 }
  0x8b   :  { %99 = vmatmul.f32.vlgmr.msra.gmra.mxu1 %v61_v25 }
  0x8e   :  { %v58_v26 = vpop.f32.mrf.mxu0 }
  0x8f   :  { %v59_v27 = vadd.f32 %v147_v22, %v58_v26 }
  0x91   :  { %v62_v28 = vmax.f32 %v59_v27, 0.0 }
  0x93   :  { %102 = vmatmul.f32.vlgmr.msra.gmra.mxu2 %v62_v28 }
 0x108   :  { %v100_v30 = vpop.f32.mrf.mxu1 }
 0x109   :  { %v101_v31 = vadd.f32 %v148_v29, %v100_v30 }
 0x10b   :  { %106 = vst.msk [vmem:[#allocation2] sm:$0xff] %vm31_vm0, %v101_v31 }
 0x116   :  { %v103_v32 = vpop.f32.mrf.mxu2 }
 0x117   :  { %v104_v33 = vadd.f32 %v148_v29, %v103_v32 }
 0x119   :  { %107 = vst.msk [vmem:[#allocation2 + $0x8] sm:$0xff] %vm31_vm0, %v104_v33 }
 0x11a   :  { %120 = dma.vmem_to_hbm [thread:$0]  %s113_s13, 256, %s115_s15, [#allocation3], %s176_s16, %s176_s16, %s177_s17  }
 0x11b   :  { %173 = dma.done.wait [#allocation3], 256  }
 0x11c   :  { %174 = vsyncadd [#allocation3], 4294967040 }
 0x11d   :  { %125 = vsyncpa [#allocation3], 1 }

// kernel: tpu_custom_call.1
= control target key start
LH: loop header
LB: loop body
LE: loop exit
PB: predicated region body
PF: predicated region fallthrough
CT: control target
= control target key end

     0   :  { %vm31_vm0 = vcmask 261120   ;;  %s287_s0 = inlined_call_operand.vmem [shape: f32[16,32], index: 0, kind: input, shape index: {}]   ;;  %s288_s1 = inlined_call_operand.vmem [shape: f32[32,128], index: 1, kind: input, shape index: {}]   ;;  %s289_s2 = inlined_call_operand.vmem [shape: f32[1,128], index: 2, kind: input, shape index: {}]   ;;  %s290_s3 = inlined_call_operand.vmem [shape: f32[128,32], index: 3, kind: input, shape index: {}]   ;;  %s291_s4 = inlined_call_operand.vmem [shape: f32[1,32], index: 4, kind: input, shape index: {}]   ;;  %s292_s5 = inlined_call_operand.hbm [shape: f32[16,32], index: 5, kind: output, shape index: {}]  }
   0x1   :  { %v26_v0 = vld [vmem:[%s288_s1 + $0x18] sm:$0xff]  ;;  %v25_v1 = vld [vmem:[%s288_s1 + $0x10] sm:$0xff]  ;;  %v24_v2 = vld [vmem:[%s288_s1 + $0x8] sm:$0xff] }
   0x2   :  { %50 = vmatpush.msra.mxu0 %v26_v0  ;;  %v78_v3 = vld [vmem:[%s290_s3 + $0x78] sm:$0xff]  ;;  %v77_v4 = vld [vmem:[%s290_s3 + $0x70] sm:$0xff]  ;;  %v23_v5 = vld [vmem:[%s288_s1] sm:$0xff] }
   0x3   :  { %83 = vmatpush.msra.mxu1 %v78_v3  ;;  %v76_v6 = vld [vmem:[%s290_s3 + $0x68] sm:$0xff]  ;;  %128 = vmatpush.msra.mxu2 %v78_v3  ;;  %v21_v7 = vld [vmem:[%s287_s0] sm:$0xff] }
   0x4   :  { %51 = vmatpush.msra.mxu0 %v25_v1  ;;  %v75_v8 = vld [vmem:[%s290_s3 + $0x60] sm:$0xff] }
   0x5   :  { %84 = vmatpush.msra.mxu1 %v77_v4  ;;  %129 = vmatpush.msra.mxu2 %v77_v4 }
   0x6   :  { %52 = vmatpush.msra.mxu0 %v24_v2 }
   0x7   :  { %85 = vmatpush.msra.mxu1 %v76_v6 }
   0x8   :  { %53 = vmatpush.msra.mxu0 %v23_v5 }
   0x9   :  { %10 = vsyncpa [#allocation3], 0  ;;  %126 = vmatmul.msk.f32.vlgmr.msra.gmra.mxu0 %vm31_vm0, %v21_v7  ;;  %v74_v9 = vld [vmem:[%s290_s3 + $0x58] sm:$0xff]  ;;  %130 = vmatpush.msra.mxu2 %v76_v6  ;;  %v73_v10 = vld [vmem:[%s290_s3 + $0x50] sm:$0xff]  ;;  %s114_s15 = sshll.u32 %s292_s5, 4  ;;  %s176_s16 = smov 128   ;;  %s115_s15 = int_to_ptr.hbm [resolvable:$true] %s114_s15 }
   0xa   :  { %86 = vmatpush.msra.mxu1 %v75_v8  ;;  %v72_v11 = vld [vmem:[%s290_s3 + $0x48] sm:$0xff]  ;;  %v71_v13 = vld [vmem:[%s290_s3 + $0x40] sm:$0xff]  ;;  %v70_v14 = vld [vmem:[%s290_s3 + $0x38] sm:$0xff]  ;;  %s177_s17 = smov 8  }
   0xb   :  { %131 = vmatpush.msra.mxu2 %v75_v8  ;;  %v22_v12 = vld [vmem:[%s287_s0 + $0x8] sm:$0xff]  ;;  %v69_v15 = vld [vmem:[%s290_s3 + $0x30] sm:$0xff]  ;;  %v67_v17 = vld [vmem:[%s290_s3 + $0x20] sm:$0xff] }
   0xc   :  { %87 = vmatpush.msra.mxu1 %v74_v9  ;;  %v68_v16 = vld [vmem:[%s290_s3 + $0x28] sm:$0xff]  ;;  %v66_v18 = vld [vmem:[%s290_s3 + $0x18] sm:$0xff]  ;;  %v65_v19 = vld [vmem:[%s290_s3 + $0x10] sm:$0xff] }
   0xd   :  { %132 = vmatpush.msra.mxu2 %v74_v9  ;;  %v64_v20 = vld [vmem:[%s290_s3 + $0x8] sm:$0xff]  ;;  %v63_v21 = vld [vmem:[%s290_s3] sm:$0xff]  ;;  %s175_s3 = smov [#allocation2]  }
   0xe   :  { %88 = vmatpush.msra.mxu1 %v73_v10  ;;  %v147_v22 = vld [vmem:[%s289_s2] ss:$0 sm:$0xff]  ;;  %s112_s13 = sshll.u32 %s175_s3, 4  ;;  %s113_s13 = int_to_ptr.vmem [resolvable:$true] %s112_s13 }
   0xf   :  { %133 = vmatpush.msra.mxu2 %v73_v10  ;;  %v148_v29 = vld [vmem:[%s291_s4] ss:$0 sm:$0xff] }
  0x10   :  { %89 = vmatpush.msra.mxu1 %v72_v11 }
  0x11   :  { %127 = vmatmul.msk.f32.gmra.mxu0 %vm31_vm0, %v22_v12  ;;  %134 = vmatpush.msra.mxu2 %v72_v11 }
  0x12   :  { %90 = vmatpush.msra.mxu1 %v71_v13 }
  0x13   :  { %135 = vmatpush.msra.mxu2 %v71_v13 }
  0x14   :  { %91 = vmatpush.msra.mxu1 %v70_v14 }
  0x15   :  { %136 = vmatpush.msra.mxu2 %v70_v14 }
  0x16   :  { %92 = vmatpush.msra.mxu1 %v69_v15 }
  0x17   :  { %137 = vmatpush.msra.mxu2 %v69_v15 }
  0x18   :  { %93 = vmatpush.msra.mxu1 %v68_v16 }
  0x19   :  { %138 = vmatpush.msra.mxu2 %v68_v16 }
  0x1a   :  { %94 = vmatpush.msra.mxu1 %v67_v17 }
  0x1b   :  { %139 = vmatpush.msra.mxu2 %v67_v17 }
  0x1c   :  { %95 = vmatpush.msra.mxu1 %v66_v18 }
  0x1d   :  { %140 = vmatpush.msra.mxu2 %v66_v18 }
  0x1e   :  { %96 = vmatpush.msra.mxu1 %v65_v19 }
  0x1f   :  { %141 = vmatpush.msra.mxu2 %v65_v19 }
  0x20   :  { %97 = vmatpush.msra.mxu1 %v64_v20 }
  0x21   :  { %142 = vmatpush.msra.mxu2 %v64_v20 }
  0x22   :  { %98 = vmatpush.msra.mxu1 %v63_v21 }
  0x23   :  { %143 = vmatpush.msra.mxu2 %v63_v21 }
  0x86   :  { %v55_v23 = vpop.f32.mrf.mxu0 }
  0x87   :  { %v56_v24 = vadd.f32 %v147_v22, %v55_v23 }
  0x89   :  { %v61_v25 = vmax.f32 %v56_v24, 0.0 }
  0x8b   :  { %99 = vmatmul.f32.vlgmr.msra.gmra.mxu1 %v61_v25 }
  0x8e   :  { %v58_v26 = vpop.f32.mrf.mxu0 }
  0x8f   :  { %v59_v27 = vadd.f32 %v147_v22, %v58_v26 }
  0x91   :  { %v62_v28 = vmax.f32 %v59_v27, 0.0 }
  0x93   :  { %102 = vmatmul.f32.vlgmr.msra.gmra.mxu2 %v62_v28 }
 0x108   :  { %v100_v30 = vpop.f32.mrf.mxu1 }
 0x109   :  { %v101_v31 = vadd.f32 %v148_v29, %v100_v30 }
 0x10b   :  { %106 = vst.msk [vmem:[#allocation2] sm:$0xff] %vm31_vm0, %v101_v31 }
 0x116   :  { %v103_v32 = vpop.f32.mrf.mxu2 }
 0x117   :  { %v104_v33 = vadd.f32 %v148_v29, %v103_v32 }
 0x119   :  { %107 = vst.msk [vmem:[#allocation2 + $0x8] sm:$0xff] %vm31_vm0, %v104_v33 }
 0x11a   :  { %120 = dma.vmem_to_hbm [thread:$0]  %s113_s13, 256, %s115_s15, [#allocation3], %s176_s16, %s176_s16, %s177_s17  }
 0x11b   :  { %173 = dma.done.wait [#allocation3], 256  }
 0x11c   :  { %174 = vsyncadd [#allocation3], 4294967040 }
 0x11d   :  { %125 = vsyncpa [#allocation3], 1 }

</bundles_post_ra>
